<compile_context>
chip_gen: v7x
topology: tpu7x:2x2x1
jax: 0.10.0
libtpu: 0.0.40
codegen_flags: <defaults>
</compile_context>

<pallas_src>
import jax
import jax.numpy as jnp
from jax import lax
from jax.experimental import pallas as pl
from jax.experimental.pallas import tpu as pltpu


def _round_up(x, m):
    return ((x + m - 1) // m) * m


def _choose_row_tile(B, Ho, Wo, target_rows):
    """Pick tho = Ho-rows per block.  Constraints:
       * tho divides Ho (no ragged blocks, no padding copy),
       * output block lane dim tho*Wo is a multiple of 128 or the full Ho*Wo
         extent (legal + lane-dense stores when possible),
       * prefer the largest such tile with tho*Wo <= target_rows,
       * keep >= 2 grid steps when possible so both v7x TensorCores get work."""
    divisors = [t for t in range(1, Ho + 1) if Ho % t == 0]
    legal = [t for t in divisors if (t * Wo) % 128 == 0 or t == Ho]
    fitting = [t for t in legal if t * Wo <= target_rows]
    tho = max(fitting) if fitting else min(legal)
    if B * (Ho // tho) < 2:
        smaller = [t for t in legal if t < tho]
        if smaller:
            tho = max(smaller)
    return tho


def _fused_patch_kernel(x_ref, w_ref, b_ref, o_ref):
    """One (batch, Ho-chunk) tile.

    x_ref: (1, C, tho, k, Wo, k)  input patches (compute dtype)
    w_ref: (k, C_out, C*k)        effective weight, rows ordered (c, kj), resident
    b_ref: (C_out, 1)             effective bias (f32), resident
    o_ref: (1, C_out, tho*Wo)     NCHW output slab for this tile
    """
    _, C, tho, k, Wo, _ = x_ref.shape
    n_out = o_ref.shape[1]
    m = tho * Wo

    acc = jnp.zeros((n_out, m), jnp.float32)
    # In-VMEM patch extraction: per ki, take the (C, tho, Wo, kj) slab, fold
    # (ho, wo) into the matmul columns and (c, kj) into the contraction rows.
    # Reshapes only merge leading dims (minor dim unchanged); the single
    # cross-lane op is a batched minor-2 transpose (XLU, hidden under DMA).
    for ki in range(k):
        xs = x_ref[0, :, :, ki, :, :]          # (C, tho, Wo, k)
        xs = xs.reshape(C, m, k)               # columns (ho, wo) merged
        xs = jnp.swapaxes(xs, 1, 2)            # (C, k, m)
        xs = xs.reshape(C * k, m)              # rows (c, kj)
        acc = acc + jnp.dot(w_ref[ki], xs, preferred_element_type=jnp.float32)
    o_ref[0] = (acc + b_ref[...]).astype(o_ref.dtype)


def _patch_down_conv_fused(x, w_eff, b_eff, k, compute_dtype, out_dtype,
                           target_rows):
    B, C_in, H, W = x.shape
    C_out = w_eff.shape[0]
    Ho, Wo = H // k, W // k
    tho = _choose_row_tile(B, Ho, Wo, target_rows)
    n_h = Ho // tho

    # Free, layout-compatible reshape (no HBM movement); cast only if needed.
    x6 = x.reshape(B, C_in, Ho, k, Wo, k)
    if x6.dtype != compute_dtype:
        x6 = x6.astype(compute_dtype)

    # Effective weight in (ki, oc, (c, kj)) order to match the kernel's RHS rows.
    w_arr = jnp.transpose(w_eff, (2, 0, 1, 3)).reshape(k, C_out, C_in * k)
    w_arr = w_arr.astype(compute_dtype)
    b_arr = b_eff.reshape(C_out, 1).astype(jnp.float32)

    # VMEM budget from tile arithmetic (double-buffered blocks + headroom),
    # capped at 64 MiB so the same request also fits v7x physical VMEM.
    itin = jnp.dtype(compute_dtype).itemsize
    itout = jnp.dtype(out_dtype).itemsize
    in_blk = C_in * tho * k * Wo * k * itin
    out_blk = C_out * tho * Wo * itout
    w_bytes = k * C_out * C_in * k * itin
    need = 2 * (in_blk + out_blk + w_bytes) + 2 * C_out * 4
    vmem_limit = int(min(max(2 * need + (2 << 20), 16 << 20), 64 << 20))

    out = pl.pallas_call(
        _fused_patch_kernel,
        out_shape=jax.ShapeDtypeStruct((B, C_out, Ho * Wo), out_dtype),
        grid=(B, n_h),
        in_specs=[
            pl.BlockSpec((1, C_in, tho, k, Wo, k),
                         lambda b, h: (b, 0, h, 0, 0, 0)),      # streamed patches
            pl.BlockSpec((k, C_out, C_in * k), lambda b, h: (0, 0, 0)),  # resident W_eff
            pl.BlockSpec((C_out, 1), lambda b, h: (0, 0)),               # resident bias
        ],
        out_specs=pl.BlockSpec((1, C_out, tho * Wo), lambda b, h: (b, 0, h)),
        compiler_params=pltpu.CompilerParams(
            dimension_semantics=("parallel", "parallel"),
            vmem_limit_bytes=vmem_limit,
        ),
    )(x6, w_arr, b_arr)

    # Pure metadata reshape to NCHW — no transpose, no extra HBM pass.
    return out.reshape(B, C_out, Ho, Wo)


def _im2col_matmul_kernel(p_ref, w_ref, b_ref, o_ref):
    o_ref[...] = (jnp.dot(p_ref[...], w_ref[...],
                          preferred_element_type=jnp.float32)
                  + b_ref[...]).astype(o_ref.dtype)


def _patch_down_conv_im2col(x, w_eff, b_eff, k, compute_dtype, out_dtype):
    """Known-good fallback (previous version): wrapper im2col + one matmul.
    Pays extra HBM round-trips; only used if the fused kernel fails to lower."""
    B, C_in, H, W = x.shape
    C_out = w_eff.shape[0]
    Ho, Wo = H // k, W // k
    M, K = B * Ho * Wo, C_in * k * k
    patches = (x.reshape(B, C_in, Ho, k, Wo, k)
                .transpose(0, 2, 4, 1, 3, 5)
                .reshape(M, K).astype(compute_dtype))
    w_mat = w_eff.transpose(1, 2, 3, 0).reshape(K, C_out).astype(compute_dtype)
    b_mat = b_eff.reshape(1, C_out).astype(jnp.float32)

    tm = min(512, _round_up(M, 8))
    M_pad = _round_up(M, tm)
    if M_pad != M:
        patches = jnp.pad(patches, ((0, M_pad - M), (0, 0)))

    out = pl.pallas_call(
        _im2col_matmul_kernel,
        out_shape=jax.ShapeDtypeStruct((M_pad, C_out), out_dtype),
        grid=(M_pad // tm,),
        in_specs=[pl.BlockSpec((tm, K), lambda i: (i, 0)),
                  pl.BlockSpec((K, C_out), lambda i: (0, 0)),
                  pl.BlockSpec((1, C_out), lambda i: (0, 0))],
        out_specs=pl.BlockSpec((tm, C_out), lambda i: (i, 0)),
        compiler_params=pltpu.CompilerParams(
            dimension_semantics=("parallel",)),
    )(patches, w_mat, b_mat)
    return out[:M].reshape(B, Ho, Wo, C_out).transpose(0, 3, 1, 2)


def patch_down_conv(x, weight, bias, alpha, kernel_size=4, *,
                    compute_dtype=jnp.bfloat16, target_block_rows=1024):
    """x: (B, C_in, H, W) NCHW.  weight: (C_out, C_in, k, k).  bias: (C_out,).
    alpha: scalar (or shape-(1,) array).  Returns (B, C_out, H//k, W//k) NCHW.

    compute_dtype=bf16 streams activation/weight at half the HBM bytes with f32
    MXU accumulation; pass jnp.float32 for <=1e-5 agreement with the reference.
    """
    k = kernel_size
    B, C_in, H, W = x.shape
    C_out = weight.shape[0]
    assert C_out % C_in == 0, "out_channels must be a multiple of in_channels"
    assert H % k == 0 and W % k == 0, "spatial dims must divide kernel_size"
    cf = C_out // C_in
    out_dtype = x.dtype

    # Fold skip (mean-pool + contiguous channel repeat) and alpha into one
    # effective weight/bias: both branches are linear in the same k x k patch.
    alpha = jnp.asarray(alpha, jnp.float32).reshape(())
    skip_w = (jnp.arange(C_in)[None, :] == (jnp.arange(C_out)[:, None] // cf))
    skip_w = skip_w.astype(jnp.float32) / float(k * k)             # (C_out, C_in)
    w_eff = alpha * weight.astype(jnp.float32) + skip_w[:, :, None, None]
    b_eff = alpha * bias.astype(jnp.float32)

    try:
        return _patch_down_conv_fused(x, w_eff, b_eff, k, compute_dtype,
                                      out_dtype, target_block_rows)
    except Exception:
        # TODO(synk): drop this fallback once the in-kernel patch rearrange
        # (leading-dim reshapes + batched minor-2 transpose) is confirmed to
        # lower on every target jax/Mosaic version; it re-introduces the
        # wrapper im2col HBM round-trip.
        return _patch_down_conv_im2col(x, w_eff, b_eff, k, compute_dtype,
                                       out_dtype)


def patch_down_conv_reference(x, weight, bias, alpha, kernel_size=4):
    """Pure-JAX reference matching the PyTorch forward."""
    k = kernel_size
    B, C_in, H, W = x.shape
    C_out = weight.shape[0]
    cf = C_out // C_in
    skip = x.reshape(B, C_in, H // k, k, W // k, k).mean(axis=(3, 5))
    skip = jnp.repeat(skip, cf, axis=1)            # 'b c h w -> b (c n) h w'
    conv = lax.conv_general_dilated(
        x, weight, window_strides=(k, k), padding="VALID",
        dimension_numbers=("NCHW", "OIHW", "NCHW"),
    ) + bias.reshape(1, C_out, 1, 1)
    return skip + alpha * conv


if __name__ == "__main__":
    key = jax.random.PRNGKey(0)
    k1, k2, k3 = jax.random.split(key, 3)

    B, C_in, H, W = 2, 4, 16, 16
    kernel_size = 4
    C_out = 16          # channels_factor = 4
    alpha = 1.0

    x = jax.random.normal(k1, (B, C_in, H, W), dtype=jnp.float32)
    fan_in = C_in * kernel_size * kernel_size
    bound = 1.0 / (fan_in ** 0.5)
    weight = jax.random.uniform(k2, (C_out, C_in, kernel_size, kernel_size),
                                minval=-bound, maxval=bound, dtype=jnp.float32)
    bias = jax.random.uniform(k3, (C_out,), minval=-bound, maxval=bound,
                              dtype=jnp.float32)

    ref = patch_down_conv_reference(x, weight, bias, alpha, kernel_size)

    # Exact f32 operand path.
    out_f32 = patch_down_conv(x, weight, bias, alpha, kernel_size,
                              compute_dtype=jnp.float32)
    out_f32 = jax.block_until_ready(out_f32)
    assert out_f32.shape == (B, C_out, H // kernel_size, W // kernel_size)
    assert jnp.allclose(out_f32, ref, atol=1e-5, rtol=1e-5), "f32 mismatch"

    # Default bf16-operand path (f32 accumulation); tolerance reflects bf16
    # rounding of the streamed activation and folded weight.
    out_bf16 = patch_down_conv(x, weight, bias, alpha, kernel_size)
    out_bf16 = jax.block_until_ready(out_bf16)
    assert out_bf16.shape == (B, C_out, H // kernel_size, W // kernel_size)
    assert jnp.allclose(out_bf16, ref, atol=5e-2, rtol=5e-2), "bf16 mismatch"

    print("KERNEL_OK")
</pallas_src>

<mosaic_0001>
module attributes {stable_mosaic.version = 11 : i64} {
  func.func @_fused_patch_kernel(%arg0: i32, %arg1: i32, %arg2: memref<1x4x4x4x4x4xf32, #tpu.memory_space<vmem>>, %arg3: memref<4x16x16xf32, #tpu.memory_space<vmem>>, %arg4: memref<16x1xf32, #tpu.memory_space<vmem>>, %arg5: memref<1x16x16xf32, #tpu.memory_space<vmem>>) attributes {dimension_semantics = [#tpu.dimension_semantics<parallel>, #tpu.dimension_semantics<parallel>], iteration_bounds = array<i64: 2, 1>, scalar_prefetch = 0 : i64, scratch_operands = 0 : i64, tpu.core_type = #tpu.core_type<tc>, window_params = [{transform_indices = @transform_0, window_bounds = array<i64: 1, 4, 4, 4, 4, 4>}, {pipeline_mode = #tpu.pipeline_mode<synchronous>, transform_indices = @transform_1, window_bounds = array<i64: 4, 16, 16>}, {pipeline_mode = #tpu.pipeline_mode<synchronous>, transform_indices = @transform_2, window_bounds = array<i64: 16, 1>}, {transform_indices = @transform_3, window_bounds = array<i64: 1, 16, 16>}]} {
    %cst = arith.constant 0.000000e+00 : f32
    %0 = vector.broadcast %cst : f32 to vector<16x16xf32>
    %c0 = arith.constant 0 : index
    %c0_0 = arith.constant 0 : index
    %c0_1 = arith.constant 0 : index
    %c0_2 = arith.constant 0 : index
    %c0_3 = arith.constant 0 : index
    %c0_4 = arith.constant 0 : index
    %1 = vector.load %arg2[%c0, %c0_0, %c0_1, %c0_2, %c0_3, %c0_4] : memref<1x4x4x4x4x4xf32, #tpu.memory_space<vmem>>, vector<1x4x4x1x4x4xf32>
    %2 = vector.shape_cast %1 : vector<1x4x4x1x4x4xf32> to vector<4x4x4x4xf32>
    %3 = vector.shape_cast %2 : vector<4x4x4x4xf32> to vector<4x16x4xf32>
    %4 = tpu.transpose %3, [0, 2, 1] : vector<4x16x4xf32> -> vector<4x4x16xf32>
    %5 = vector.shape_cast %4 : vector<4x4x16xf32> to vector<16x16xf32>
    %c0_5 = arith.constant 0 : index
    %c0_6 = arith.constant 0 : index
    %c0_7 = arith.constant 0 : index
    %6 = vector.load %arg3[%c0_5, %c0_6, %c0_7] : memref<4x16x16xf32, #tpu.memory_space<vmem>>, vector<1x16x16xf32>
    %7 = vector.shape_cast %6 : vector<1x16x16xf32> to vector<16x16xf32>
    %cst_8 = arith.constant dense<0.000000e+00> : vector<16x16xf32>
    %8 = tpu.matmul %7, %5, %cst_8 {dimension_numbers = #tpu.dot_dimension_numbers<[1], [0], [0], [1], [0, 0, 1, 1], [], []>} : vector<16x16xf32>, vector<16x16xf32>, vector<16x16xf32> -> vector<16x16xf32>
    %9 = arith.addf %0, %8 : vector<16x16xf32>
    %c0_9 = arith.constant 0 : index
    %c0_10 = arith.constant 0 : index
    %c0_11 = arith.constant 0 : index
    %c1 = arith.constant 1 : index
    %c0_12 = arith.constant 0 : index
    %c0_13 = arith.constant 0 : index
    %10 = vector.load %arg2[%c0_9, %c0_10, %c0_11, %c1, %c0_12, %c0_13] : memref<1x4x4x4x4x4xf32, #tpu.memory_space<vmem>>, vector<1x4x4x1x4x4xf32>
    %11 = vector.shape_cast %10 : vector<1x4x4x1x4x4xf32> to vector<4x4x4x4xf32>
    %12 = vector.shape_cast %11 : vector<4x4x4x4xf32> to vector<4x16x4xf32>
    %13 = tpu.transpose %12, [0, 2, 1] : vector<4x16x4xf32> -> vector<4x4x16xf32>
    %14 = vector.shape_cast %13 : vector<4x4x16xf32> to vector<16x16xf32>
    %c1_14 = arith.constant 1 : index
    %c0_15 = arith.constant 0 : index
    %c0_16 = arith.constant 0 : index
    %15 = vector.load %arg3[%c1_14, %c0_15, %c0_16] : memref<4x16x16xf32, #tpu.memory_space<vmem>>, vector<1x16x16xf32>
    %16 = vector.shape_cast %15 : vector<1x16x16xf32> to vector<16x16xf32>
    %cst_17 = arith.constant dense<0.000000e+00> : vector<16x16xf32>
    %17 = tpu.matmul %16, %14, %cst_17 {dimension_numbers = #tpu.dot_dimension_numbers<[1], [0], [0], [1], [0, 0, 1, 1], [], []>} : vector<16x16xf32>, vector<16x16xf32>, vector<16x16xf32> -> vector<16x16xf32>
    %18 = arith.addf %9, %17 : vector<16x16xf32>
    %c0_18 = arith.constant 0 : index
    %c0_19 = arith.constant 0 : index
    %c0_20 = arith.constant 0 : index
    %c2 = arith.constant 2 : index
    %c0_21 = arith.constant 0 : index
    %c0_22 = arith.constant 0 : index
    %19 = vector.load %arg2[%c0_18, %c0_19, %c0_20, %c2, %c0_21, %c0_22] : memref<1x4x4x4x4x4xf32, #tpu.memory_space<vmem>>, vector<1x4x4x1x4x4xf32>
    %20 = vector.shape_cast %19 : vector<1x4x4x1x4x4xf32> to vector<4x4x4x4xf32>
    %21 = vector.shape_cast %20 : vector<4x4x4x4xf32> to vector<4x16x4xf32>
    %22 = tpu.transpose %21, [0, 2, 1] : vector<4x16x4xf32> -> vector<4x4x16xf32>
    %23 = vector.shape_cast %22 : vector<4x4x16xf32> to vector<16x16xf32>
    %c2_23 = arith.constant 2 : index
    %c0_24 = arith.constant 0 : index
    %c0_25 = arith.constant 0 : index
    %24 = vector.load %arg3[%c2_23, %c0_24, %c0_25] : memref<4x16x16xf32, #tpu.memory_space<vmem>>, vector<1x16x16xf32>
    %25 = vector.shape_cast %24 : vector<1x16x16xf32> to vector<16x16xf32>
    %cst_26 = arith.constant dense<0.000000e+00> : vector<16x16xf32>
    %26 = tpu.matmul %25, %23, %cst_26 {dimension_numbers = #tpu.dot_dimension_numbers<[1], [0], [0], [1], [0, 0, 1, 1], [], []>} : vector<16x16xf32>, vector<16x16xf32>, vector<16x16xf32> -> vector<16x16xf32>
    %27 = arith.addf %18, %26 : vector<16x16xf32>
    %c0_27 = arith.constant 0 : index
    %c0_28 = arith.constant 0 : index
    %c0_29 = arith.constant 0 : index
    %c3 = arith.constant 3 : index
    %c0_30 = arith.constant 0 : index
    %c0_31 = arith.constant 0 : index
    %28 = vector.load %arg2[%c0_27, %c0_28, %c0_29, %c3, %c0_30, %c0_31] : memref<1x4x4x4x4x4xf32, #tpu.memory_space<vmem>>, vector<1x4x4x1x4x4xf32>
    %29 = vector.shape_cast %28 : vector<1x4x4x1x4x4xf32> to vector<4x4x4x4xf32>
    %30 = vector.shape_cast %29 : vector<4x4x4x4xf32> to vector<4x16x4xf32>
    %31 = tpu.transpose %30, [0, 2, 1] : vector<4x16x4xf32> -> vector<4x4x16xf32>
    %32 = vector.shape_cast %31 : vector<4x4x16xf32> to vector<16x16xf32>
    %c3_32 = arith.constant 3 : index
    %c0_33 = arith.constant 0 : index
    %c0_34 = arith.constant 0 : index
    %33 = vector.load %arg3[%c3_32, %c0_33, %c0_34] : memref<4x16x16xf32, #tpu.memory_space<vmem>>, vector<1x16x16xf32>
    %34 = vector.shape_cast %33 : vector<1x16x16xf32> to vector<16x16xf32>
    %cst_35 = arith.constant dense<0.000000e+00> : vector<16x16xf32>
    %35 = tpu.matmul %34, %32, %cst_35 {dimension_numbers = #tpu.dot_dimension_numbers<[1], [0], [0], [1], [0, 0, 1, 1], [], []>} : vector<16x16xf32>, vector<16x16xf32>, vector<16x16xf32> -> vector<16x16xf32>
    %36 = arith.addf %27, %35 : vector<16x16xf32>
    %c0_36 = arith.constant 0 : index
    %c0_37 = arith.constant 0 : index
    %37 = vector.load %arg4[%c0_36, %c0_37] : memref<16x1xf32, #tpu.memory_space<vmem>>, vector<16x1xf32>
    %38 = vector.broadcast %37 : vector<16x1xf32> to vector<16x16xf32>
    %39 = arith.addf %36, %38 : vector<16x16xf32>
    %c0_38 = arith.constant 0 : index
    %c0_39 = arith.constant 0 : index
    %c0_40 = arith.constant 0 : index
    %40 = vector.load %arg5[%c0_38, %c0_39, %c0_40] : memref<1x16x16xf32, #tpu.memory_space<vmem>>, vector<1x16x16xf32>
    %41 = vector.shape_cast %40 : vector<1x16x16xf32> to vector<16x16xf32>
    %42 = vector.shape_cast %39 : vector<16x16xf32> to vector<1x16x16xf32>
    tpu.vector_store %arg5[%c0_38, %c0_39, %c0_40], %42 {strides = array<i32>} : memref<1x16x16xf32, #tpu.memory_space<vmem>>, vector<1x16x16xf32>,
    return
  }
  func.func @transform_0(%arg0: i32, %arg1: i32) -> (i32, i32, i32, i32, i32, i32) {
    %c0_i32 = arith.constant 0 : i32
    %c0_i32_0 = arith.constant 0 : i32
    %c0_i32_1 = arith.constant 0 : i32
    %c0_i32_2 = arith.constant 0 : i32
    %c0_i32_3 = arith.constant 0 : i32
    return %arg0, %c0_i32, %arg1, %c0_i32_0, %c0_i32_1, %c0_i32_2 : i32, i32, i32, i32, i32, i32
  }
  func.func @transform_1(%arg0: i32, %arg1: i32) -> (i32, i32, i32) {
    %c0_i32 = arith.constant 0 : i32
    %c0_i32_0 = arith.constant 0 : i32
    %c0_i32_1 = arith.constant 0 : i32
    %c0_i32_2 = arith.constant 0 : i32
    return %c0_i32, %c0_i32_0, %c0_i32_1 : i32, i32, i32
  }
  func.func @transform_2(%arg0: i32, %arg1: i32) -> (i32, i32) {
    %c0_i32 = arith.constant 0 : i32
    %c0_i32_0 = arith.constant 0 : i32
    %c0_i32_1 = arith.constant 0 : i32
    return %c0_i32, %c0_i32_0 : i32, i32
  }
  func.func @transform_3(%arg0: i32, %arg1: i32) -> (i32, i32, i32) {
    %c0_i32 = arith.constant 0 : i32
    %c0_i32_0 = arith.constant 0 : i32
    return %arg0, %c0_i32, %arg1 : i32, i32, i32
  }
}

module attributes {stable_mosaic.version = 11 : i64} {
  func.func @_im2col_matmul_kernel(%arg0: i32, %arg1: memref<32x64xf32, #tpu.memory_space<vmem>>, %arg2: memref<64x16xf32, #tpu.memory_space<vmem>>, %arg3: memref<1x16xf32, #tpu.memory_space<vmem>>, %arg4: memref<32x16xf32, #tpu.memory_space<vmem>>) attributes {dimension_semantics = [#tpu.dimension_semantics<parallel>], iteration_bounds = array<i64: 1>, scalar_prefetch = 0 : i64, scratch_operands = 0 : i64, tpu.core_type = #tpu.core_type<tc>, window_params = [{transform_indices = @transform_0, window_bounds = array<i64: 32, 64>}, {pipeline_mode = #tpu.pipeline_mode<synchronous>, transform_indices = @transform_1, window_bounds = array<i64: 64, 16>}, {pipeline_mode = #tpu.pipeline_mode<synchronous>, transform_indices = @transform_2, window_bounds = array<i64: 1, 16>}, {transform_indices = @transform_3, window_bounds = array<i64: 32, 16>}]} {
    %c0 = arith.constant 0 : index
    %c0_0 = arith.constant 0 : index
    %0 = vector.load %arg1[%c0, %c0_0] : memref<32x64xf32, #tpu.memory_space<vmem>>, vector<32x64xf32>
    %c0_1 = arith.constant 0 : index
    %c0_2 = arith.constant 0 : index
    %1 = vector.load %arg2[%c0_1, %c0_2] : memref<64x16xf32, #tpu.memory_space<vmem>>, vector<64x16xf32>
    %cst = arith.constant dense<0.000000e+00> : vector<32x16xf32>
    %2 = tpu.matmul %0, %1, %cst {dimension_numbers = #tpu.dot_dimension_numbers<[1], [0], [0], [1], [0, 0, 1, 1], [], []>} : vector<32x64xf32>, vector<64x16xf32>, vector<32x16xf32> -> vector<32x16xf32>
    %c0_3 = arith.constant 0 : index
    %c0_4 = arith.constant 0 : index
    %3 = vector.load %arg3[%c0_3, %c0_4] : memref<1x16xf32, #tpu.memory_space<vmem>>, vector<1x16xf32>
    %4 = vector.broadcast %3 : vector<1x16xf32> to vector<32x16xf32>
    %5 = arith.addf %2, %4 : vector<32x16xf32>
    %c0_5 = arith.constant 0 : index
    %c0_6 = arith.constant 0 : index
    %6 = vector.load %arg4[%c0_5, %c0_6] : memref<32x16xf32, #tpu.memory_space<vmem>>, vector<32x16xf32>
    tpu.vector_store %arg4[%c0_5, %c0_6], %5 {strides = array<i32>} : memref<32x16xf32, #tpu.memory_space<vmem>>, vector<32x16xf32>,
    return
  }
  func.func @transform_0(%arg0: i32) -> (i32, i32) {
    %c0_i32 = arith.constant 0 : i32
    %c0_i32_0 = arith.constant 0 : i32
    return %arg0, %c0_i32 : i32, i32
  }
  func.func @transform_1(%arg0: i32) -> (i32, i32) {
    %c0_i32 = arith.constant 0 : i32
    %c0_i32_0 = arith.constant 0 : i32
    %c0_i32_1 = arith.constant 0 : i32
    return %c0_i32, %c0_i32_0 : i32, i32
  }
  func.func @transform_2(%arg0: i32) -> (i32, i32) {
    %c0_i32 = arith.constant 0 : i32
    %c0_i32_0 = arith.constant 0 : i32
    %c0_i32_1 = arith.constant 0 : i32
    return %c0_i32, %c0_i32_0 : i32, i32
  }
  func.func @transform_3(%arg0: i32) -> (i32, i32) {
    %c0_i32 = arith.constant 0 : i32
    %c0_i32_0 = arith.constant 0 : i32
    return %arg0, %c0_i32 : i32, i32
  }
}

</mosaic_0001>

<bundles_post_ra>
// kernel: tpu_custom_call.1
= control target key start
LH: loop header
LB: loop body
LE: loop exit
PB: predicated region body
PF: predicated region fallthrough
CT: control target
= control target key end

     0   :  { %8 = vsyncpa [#allocation3], 0  ;;  %s2132_s0 = inlined_call_operand.hbm [shape: f32[2,4,4,4,4,4], index: 0, kind: input, shape index: {}]   ;;  %s2133_s1 = inlined_call_operand.hbm [shape: f32[4,16,16], index: 1, kind: input, shape index: {}]   ;;  %s2134_s2 = inlined_call_operand.vmem [shape: f32[16,1], index: 2, kind: input, shape index: {}]   ;;  %s2135_s3 = inlined_call_operand.hbm [shape: f32[2,16,16], index: 3, kind: output, shape index: {}]  }
   0x1   :  { %10 = vsyncpa [#allocation3 + $0x1], 0 }
   0x2   :  { %11 = vsyncpa [#allocation6], 0 }
   0x3   :  { %12 = vsyncpa [#allocation4], 0 }
   0x4   :  { %14 = vsyncpa [#allocation4 + $0x1], 0  ;;  %s1862_s12 = smov 0   ;;  %s1864_s13 = smov 0  }
   0x5   :  { %s1866_s14 = smov 0   ;;  %s1868_s15 = smov 0  }
   0x6   :  { %s1870_s16 = smov 0   ;;  %s1872_s17 = smov 0  }
   0x7 LB: > { %s1430_s18 = sadd.s32 4294967295, %s1830_s17   ;;  %s1431_s19 = sadd.s32 4294967294, %s1830_s17   ;;  %s1830_s17 = sphi %s1872_s17, %s20_s17   ;;  %s1826_s16 = sphi %s1870_s16, %s2159_s16   ;;  %s1822_s15 = sphi %s1868_s15, %s2158_s15   ;;  %s1818_s14 = sphi %s1866_s14, %s2157_s14   ;;  %s1814_s13 = sphi %s1864_s13, %s2156_s13   ;;  %s1810_s12 = sphi %s1862_s12, %s2155_s12  }
   0x8   : > { %p54_p0 = scmp.ne.s32.totalorder %s1814_s13, %s1810_s12  ;;  %p1896_p1 = scmp.eq.s32.totalorder %s1430_s18, 0 }
   0x9   : > { %p1900_p2 = scmp.eq.s32.totalorder %s1430_s18, 1  ;;  %p128_p3 = scmp.eq.s32.totalorder %s1431_s19, 1 }
   0xa   : > { %s2140_s20 = scalar_select %p1896_p1, 1, 0 }
   0xb   : > { %s2141_s21 = scalar_select %p1900_p2, 1, 0 }
   0xc   : > { %p1906_p4 = por %p1896_p1, %p54_p0  ;;  %p1432_p5 = scmp.ge.s32.totalorder %s1830_s17, 1 }
   0xd   : > { %p1911_p6 = por %p128_p3, %p54_p0  ;;  %p135_p7 = scmp.lt.s32.totalorder %s1830_s17, 3 }
   0xe   : > { %s2142_s22 = scalar_select %p1906_p4, 1, 0 }
   0xf   : > { %s2143_s23 = scalar_select %p1911_p6, 1, 0 }
  0x10   : > { %p1916_p8 = pnand %p1432_p5, %p135_p7  ;;  %s1832_s25 = smov [#allocation5]  }
  0x11   : > { %s147_s26 = sshll.u32 %s1832_s25, 4  ;;  %s32_s28 = sadd.s32 1, %s1826_s16  ;;  %s148_s26 = int_to_ptr.vmem [resolvable:$true] %s147_s26 }
  0x12   : > { %s2144_s24 = scalar_select %p1916_p8, 1, 0 }
  0x13   : > { %p1579_p9 = pneg %p1916_p8  ;;  %s1686_s4 = scalar_lea.hbm %s2133_s1, 1024 }
  0x14   : > { %p1687_p12 = scmp.ne.s32.totalorder %s2133_s1, %s1686_s4  ;;  %p1693_p5 = scmp.lt.u32.totalorder %s1686_s4, %s2133_s1 }
  0x15   : > { %p1925_p11 = pnand %p1579_p9, %p1896_p1 }
  0x17   : > { %p1688_p13 = pneg %p1925_p11 }
  0x19   : > { %p1689_p0 = pnand %p1688_p13, %p1687_p12 }
  0x1b   : > { %p1690_p3 = pneg %p1689_p0 }
  0x1d   : > { %p1695_p7 = pnand %p1693_p5, %p1690_p3 }
  0x1f   : > { %1698 = shalt.err (!%p1695_p7)
}
  0x20   : > { %s1699_s9 = scalar_lea.vmem %s148_s26, 1024  ;;  %p1707_p1 = scmp.lt.s32.totalorder %s148_s26, %s148_s26 }
  0x21   : > { %p1700_p9 = scmp.ne.s32.totalorder %s148_s26, %s1699_s9  ;;  %p1708_p4 = scmp.lt.s32.totalorder %s1699_s9, %s1699_s9 }
  0x23   : > { %p1702_p10 = pnand %p1700_p9, %p1688_p13  ;;  %p1709_p8 = por %p1708_p4, %p1707_p1 }
  0x25   : > { %p1703_p6 = pneg %p1702_p10 }
  0x27   : > { %p1710_p2 = pnand %p1709_p8, %p1703_p6 }
  0x29   : > { %1713 = shalt.err (!%p1710_p2)
}
  0x2a   : > { %s1833_s10 = smov 128   ;;  %s1834_s11 = smov 8  }
  0x2b   : > { %1582 = dma.hbm_to_vmem [thread:$0]  (!%p1925_p11), %s2133_s1, 1024, %s148_s26, [#allocation6], %s1833_s10, %s1833_s10, %s1834_s11  }
  0x2c   : > { %p34_p1 = scmp.ge.s32.totalorder %s32_s28, 2  ;;  %s41_s25 = sadd.s32 1, %s1818_s14 }
  0x2d   : > { %p48_p2 = scmp.ne.s32.totalorder %s1818_s14, %s1814_s13  ;;  %p49_p4 = scmp.eq.s32.totalorder %s1830_s17, 0 }
  0x2e   : > { %s2161_s28 = smov (%p34_p1, %s32_s28), 0  ;;  %p2147_p8 = scmp.ne.s32.totalorder %s2141_s21, 0 }
  0x2f   : > { %p1952_p6 = por %p49_p4, %p48_p2  ;;  %s36_s27 = ssub.s32 %s1826_s16, %s2161_s28 }
  0x30   : > { %p1958_p10 = por %p2147_p8, %p48_p2  ;;  %p1592_p12 = scmp.lt.s32.totalorder %s1830_s17, 2 }
  0x31   : > { %p39_p11 = scmp.eq.s32.totalorder %s36_s27, 0  ;;  %s164_s26 = sand.u32 1, %s1818_s14  }
  0x32   : > { %s1435_s4 = sshll.u32 %s164_s26, 8  ;;  %s1503_s6 = sshll.u32 %s1826_s16, 12 }
  0x33   : > { %s1967_s5 = scalar_select %p39_p11, %s1818_s14, %s41_s25  }
  0x34   : > { %s1973_s9 = scalar_lea.hbm %s2132_s0, %s1503_s6  ;;  %s168_s21 = scalar_lea.vmem [#allocation2], %s1435_s4 }
  0x35   : > { %s178_s10 = sshll.u32 %s168_s21, 4  ;;  %p1979_p13 = pnand %p1592_p12, %p1952_p6  ;;  %s1975_s10 = int_to_ptr.vmem [resolvable:$true] %s178_s10 }
  0x36   : > { %s1983_s18 = scalar_lea.sflag [#allocation3], %s164_s26  ;;  %s1714_s19 = scalar_lea.hbm %s1973_s9, 4096 }
  0x37   : > { %p1715_p0 = scmp.ne.s32.totalorder %s1973_s9, %s1714_s19  ;;  %p1716_p3 = pneg %p1979_p13 }
  0x38   : > { %s1719_s29 = scalar_lea.hbm %s2132_s0, 8192  ;;  %p1720_p9 = scmp.lt.u32.totalorder %s1973_s9, %s2132_s0 }
  0x39   : > { %p1717_p5 = pnand %p1716_p3, %p1715_p0  ;;  %p1721_p1 = scmp.lt.u32.totalorder %s1719_s29, %s1714_s19 }
  0x3a   : > { %p1723_p4 = scmp.lt.u32.totalorder %s1714_s19, %s1973_s9 }
  0x3b   : > { %p1718_p7 = pneg %p1717_p5  ;;  %p1722_p2 = por %p1721_p1, %p1720_p9 }
  0x3d   : > { %p1724_p6 = por %p1723_p4, %p1722_p2 }
  0x3f   : > { %p1725_p8 = pnand %p1724_p6, %p1718_p7 }
  0x41   : > { %1728 = shalt.err (!%p1725_p8)
}
  0x42   : > { %s1729_s26 = scalar_lea.vmem %s1975_s10, 4096  ;;  %s1835_s7 = smov [#allocation2]  }
  0x43   : > { %p1730_p12 = scmp.ne.s32.totalorder %s1975_s10, %s1729_s26  ;;  %s1734_s8 = sshll.u32 %s1835_s7, 4  ;;  %s1735_s8 = int_to_ptr.vmem [resolvable:$false] %s1734_s8 }
  0x44   : > { %s1736_s21 = scalar_lea.vmem %s1735_s8, 8192  ;;  %p1737_p5 = scmp.lt.s32.totalorder %s1975_s10, %s1735_s8 }
  0x45   : > { %p1732_p11 = pnand %p1730_p12, %p1716_p3  ;;  %p1738_p9 = scmp.lt.s32.totalorder %s1736_s21, %s1729_s26 }
  0x47   : > { %p1733_p0 = pneg %p1732_p11  ;;  %p1739_p1 = por %p1738_p9, %p1737_p5 }
  0x49   : > { %p1740_p2 = pnand %p1739_p1, %p1733_p0 }
  0x4b   : > { %1743 = shalt.err (!%p1740_p2)
}
  0x4c   : > { %s1836_s19 = smov 64   ;;  %s1837_s25 = smov 4  }
  0x4d   : > { %1586 = dma.hbm_to_vmem [thread:$0]  (!%p1979_p13), %s1973_s9, 4096, %s1975_s10, %s1983_s18, %s1836_s19, %s1836_s19, %s1837_s25  }
  0x4e   : > { %p2150_p3 = scmp.ne.s32.totalorder %s2144_s24, 0 }
  0x4f   : > { %s2014_s27 = sand.u32 (!%p2150_p3), 1, %s1814_s13   ;;  %p2151_p7 = scmp.ne.s32.totalorder (!%p2150_p3), %s2142_s22, 0 }
  0x50   : > { %190 = sbr.rel (%p2150_p3) target bundleno = 518 (0x206), region = 32  ;;  %s1439_s29 = sshll.u32 (!%p2150_p3), %s2014_s27, 8 }
  0x51   : > { %s193_s4 = scalar_lea.sflag (!%p2150_p3), [#allocation3], %s2014_s27  ;;  %s2018_s6 = scalar_lea.vmem (!%p2150_p3), [#allocation2], %s1439_s29 }
  0x57   : > { %1797 = dma.done.wait (%p2151_p7), %s193_s4, 4096  }
  0x58   : > { %1799 = vsyncadd (%p2151_p7), %s193_s4, 4294963200  ;;  %p2152_p13 = scmp.ne.s32.totalorder %s2140_s20, 0 }
  0x5a   : > { %1801 = dma.done.wait (%p2152_p13), [#allocation6], 1024  }
  0x5b   : > { %1803 = vsyncadd (%p2152_p13), [#allocation6], 4294966272  ;;  %v1654_v0 = vld [vmem:[%s2018_s6 + $0x44] ss:$16 sps:$4 sm:$0xff]   ;;  %v1662_v8 = vld [vmem:[%s2018_s6 + $0x48] ss:$16 sps:$4 sm:$0xff]  }
  0x5c   : > { %v1655_v1 = vld [vmem:[%s2018_s6 + $0x4] ss:$16 sps:$4 sm:$0xff]   ;;  %483 = vxpose.xlu1.b32.start [1/2] (short) (narrow) %v1654_v0, 8  ;;  %v1663_v9 = vld [vmem:[%s2018_s6 + $0x8] ss:$16 sps:$4 sm:$0xff]   ;;  %vm590_vm0 = vcmask 130048  }
  0x5d   : > { %451 = vxpose.xlu0.b32.start [1/2] (short) (narrow) %v1655_v1, 8  ;;  %v1656_v2 = vld [vmem:[%s2018_s6 + $0x64] ss:$16 sps:$4 sm:$0xff]   ;;  %v1664_v10 = vld [vmem:[%s2018_s6 + $0x68] ss:$16 sps:$4 sm:$0xff]   ;;  %v1838_v35 = vmov 0  }
  0x5e   : > { %v1657_v3 = vld [vmem:[%s2018_s6 + $0x24] ss:$16 sps:$4 sm:$0xff]   ;;  %v1665_v11 = vld [vmem:[%s2018_s6 + $0x28] ss:$16 sps:$4 sm:$0xff]   ;;  %v1670_v16 = vld [vmem:[%s2018_s6 + $0x40] ss:$16 sps:$4 sm:$0xff]  }
  0x5f   : > { %v1658_v4 = vld [vmem:[%s2018_s6 + $0xc4] ss:$16 sps:$4 sm:$0xff]   ;;  %v1666_v12 = vld [vmem:[%s2018_s6 + $0xc8] ss:$16 sps:$4 sm:$0xff]   ;;  %v1671_v17 = vld [vmem:[%s2018_s6] ss:$16 sps:$4 sm:$0xff]  }
  0x60   : > { %484 = vxpose.xlu1.b32.end [2/2] (short) (narrow) %v1656_v2, 8  ;;  %v1659_v5 = vld [vmem:[%s2018_s6 + $0x84] ss:$16 sps:$4 sm:$0xff]   ;;  %v1667_v13 = vld [vmem:[%s2018_s6 + $0x88] ss:$16 sps:$4 sm:$0xff]   ;;  %s1441_s10 = sshll.u32 %s2014_s27, 4 }
  0x61   : > { %452 = vxpose.xlu0.b32.end [2/2] (short) (narrow) %v1657_v3, 8  ;;  %v1660_v6 = vld [vmem:[%s2018_s6 + $0xe4] ss:$16 sps:$4 sm:$0xff]   ;;  %v1668_v14 = vld [vmem:[%s2018_s6 + $0xe8] ss:$16 sps:$4 sm:$0xff]   ;;  %s222_s11 = scalar_lea.vmem [#allocation7], %s1441_s10 }
  0x62   : > { %v1661_v7 = vld [vmem:[%s2018_s6 + $0xa4] ss:$16 sps:$4 sm:$0xff]   ;;  %v1669_v15 = vld [vmem:[%s2018_s6 + $0xa8] ss:$16 sps:$4 sm:$0xff]   ;;  %v1672_v18 = vld [vmem:[%s2018_s6 + $0x60] ss:$16 sps:$4 sm:$0xff]  }
  0x63   : > { %v1673_v19 = vld [vmem:[%s2018_s6 + $0x20] ss:$16 sps:$4 sm:$0xff]   ;;  %v1678_v24 = vld [vmem:[%s2018_s6 + $0x4c] ss:$16 sps:$4 sm:$0xff]   ;;  %s1334_s18 = sshll.u32 %s222_s11, 4  ;;  %s1504_s26 = sshll.u32 %s1822_s15, 8  ;;  %s2076_s18 = int_to_ptr.vmem [resolvable:$true] %s1334_s18 }
  0x64   : > { %547 = vxpose.xlu1.b32.start [1/2] (short) (narrow) %v1658_v4, 8  ;;  %v1674_v20 = vld [vmem:[%s2018_s6 + $0xc0] ss:$16 sps:$4 sm:$0xff]   ;;  %v1679_v26 = vld [vmem:[%s2018_s6 + $0xc] ss:$16 sps:$4 sm:$0xff]   ;;  %s2081_s21 = scalar_lea.hbm %s2135_s3, %s1504_s26  ;;  %s1320_s15 = scalar_lea.sflag [#allocation4], %s2014_s27 }
  0x65   : > { %515 = vxpose.xlu0.b32.start [1/2] (short) (narrow) %v1659_v5, 8  ;;  %v1675_v21 = vld [vmem:[%s2018_s6 + $0x80] ss:$16 sps:$4 sm:$0xff]   ;;  %v1680_v27 = vld [vmem:[%s2018_s6 + $0x6c] ss:$16 sps:$4 sm:$0xff]   ;;  %s1744_s19 = scalar_lea.vmem %s2076_s18, 256 }
  0x66   : > { %v1676_v22 = vld [vmem:[%s2018_s6 + $0xe0] ss:$16 sps:$4 sm:$0xff]   ;;  %v1681_v28 = vld [vmem:[%s2018_s6 + $0x2c] ss:$16 sps:$4 sm:$0xff]   ;;  %p1745_p4 = scmp.ne.s32.totalorder %s2076_s18, %s1744_s19  ;;  %s1839_s25 = smov [#allocation7]  }
  0x67   : > { %v1677_v23 = vld [vmem:[%s2018_s6 + $0xa0] ss:$16 sps:$4 sm:$0xff]   ;;  %v1682_v30 = vld [vmem:[%s2018_s6 + $0xcc] ss:$16 sps:$4 sm:$0xff]   ;;  %s1748_s29 = sshll.u32 %s1839_s25, 4  ;;  %s1749_s29 = int_to_ptr.vmem [resolvable:$false] %s1748_s29 }
  0x68   : > { %548 = vxpose.xlu1.b32.end [2/2] (short) (narrow) %v1660_v6, 8  ;;  %v580_v25 = vld [vmem:[#allocation5 + $0x10] sm:$0xff]  ;;  %v939_v29 = vld [vmem:[#allocation5 + $0x20] sm:$0xff]  ;;  %v1683_v31 = vld [vmem:[%s2018_s6 + $0x8c] ss:$16 sps:$4 sm:$0xff]   ;;  %p1746_p6 = pnand %p1745_p4, %p1958_p10  ;;  %s1750_s4 = scalar_lea.vmem %s1749_s29, 512 }
  0x69   : > { %516 = vxpose.xlu0.b32.end [2/2] (short) (narrow) %v1661_v7, 8  ;;  %1525 = vmatprep.mubr.msk.f32.mxu1 %vm590_vm0, %v580_v25  ;;  %v1684_v32 = vld [vmem:[%s2018_s6 + $0xec] ss:$16 sps:$4 sm:$0xff]   ;;  %v1303_v36 = vld [vmem:[%s2134_s2] sm:$0xff]  ;;  %v1210_v54 = vld [vmem:[#allocation5 + $0x30] sm:$0xff]  ;;  %p1751_p12 = scmp.lt.s32.totalorder %s2076_s18, %s1749_s29  ;;  %p1752_p11 = scmp.lt.s32.totalorder %s1750_s4, %s1744_s19 }
  0x6a   : > { %1539 = vmatprep.mubr.msk.f32.mxu0 %vm590_vm0, %v939_v29  ;;  %v1685_v33 = vld [vmem:[%s2018_s6 + $0xac] ss:$16 sps:$4 sm:$0xff]   ;;  %v400_v45 = vld [vmem:[#allocation5] sm:$0xff]  ;;  %p1747_p8 = pneg %p1746_p6 }
  0x6b   : > { %v1304_v34 = vld [vmem:[%s2134_s2 + $0x8] sm:$0xff]  ;;  %v581_v44 = vld [vmem:[#allocation5 + $0x18] sm:$0xff]  ;;  %p1753_p0 = por %p1752_p11, %p1751_p12 }
  0x6c   : > { %842 = vxpose.xlu1.b32.start [1/2] (short) (narrow) %v1662_v8, 8  ;;  %v940_v53 = vld [vmem:[#allocation5 + $0x28] sm:$0xff]  ;;  %v1211_v6 = vld [vmem:[#allocation5 + $0x38] sm:$0xff] }
  0x6d   : > { %810 = vxpose.xlu0.b32.start [1/2] (short) (narrow) %v1663_v9, 8  ;;  %v401_v62 = vld [vmem:[#allocation5 + $0x8] sm:$0xff]  ;;  %p1754_p5 = pnand %p1753_p0, %p1747_p8 }
  0x70   : > { %843 = vxpose.xlu1.b32.end [2/2] (short) (narrow) %v1664_v10, 8 }
  0x71   : > { %811 = vxpose.xlu0.b32.end [2/2] (short) (narrow) %v1665_v11, 8 }
  0x74   : > { %906 = vxpose.xlu1.b32.start [1/2] (short) (narrow) %v1666_v12, 8 }
  0x75   : > { %874 = vxpose.xlu0.b32.start [1/2] (short) (narrow) %v1667_v13, 8 }
  0x78   : > { %907 = vxpose.xlu1.b32.end [2/2] (short) (narrow) %v1668_v14, 8 }
  0x79   : > { %875 = vxpose.xlu0.b32.end [2/2] (short) (narrow) %v1669_v15, 8 }
  0x7c   : > { %304 = vxpose.xlu1.b32.start [1/2] (short) (narrow) %v1670_v16, 8 }
  0x7d   : > { %272 = vxpose.xlu0.b32.start [1/2] (short) (narrow) %v1671_v17, 8 }
  0x80   : > { %305 = vxpose.xlu1.b32.end [2/2] (short) (narrow) %v1672_v18, 8 }
  0x81   : > { %273 = vxpose.xlu0.b32.end [2/2] (short) (narrow) %v1673_v19, 8 }
  0x84   : > { %368 = vxpose.xlu1.b32.start [1/2] (short) (narrow) %v1674_v20, 8 }
  0x85   : > { %336 = vxpose.xlu0.b32.start [1/2] (short) (narrow) %v1675_v21, 8 }
  0x88   : > { %369 = vxpose.xlu1.b32.end [2/2] (short) (narrow) %v1676_v22, 8 }
  0x89   : > { %337 = vxpose.xlu0.b32.end [2/2] (short) (narrow) %v1677_v23, 8 }
  0x8c   : > { %1113 = vxpose.xlu1.b32.start [1/2] (short) (narrow) %v1678_v24, 8 }
  0x8d   : > { %1081 = vxpose.xlu0.b32.start [1/2] (short) (narrow) %v1679_v26, 8 }
  0x90   : > { %1114 = vxpose.xlu1.b32.end [2/2] (short) (narrow) %v1680_v27, 8 }
  0x91   : > { %1082 = vxpose.xlu0.b32.end [2/2] (short) (narrow) %v1681_v28, 8 }
  0x94   : > { %1177 = vxpose.xlu1.b32.start [1/2] (short) (narrow) %v1682_v30, 8 }
  0x95   : > { %1145 = vxpose.xlu0.b32.start [1/2] (short) (narrow) %v1683_v31, 8 }
  0x98   : > { %1178 = vxpose.xlu1.b32.end [2/2] (short) (narrow) %v1684_v32, 8 }
  0x99   : > { %1146 = vxpose.xlu0.b32.end [2/2] (short) (narrow) %v1685_v33, 8 }
  0xb6   : > { %1653 = vset.pattern.permute.xlu1 %v1838_v35 }
  0xb7   : > { %1312 = vperm.xlu1 %1653, %v1304_v34  }
  0xc2   : > { %1652 = vset.pattern.permute.xlu0 %v1838_v35 }
  0xc3   : > { %1307 = vperm.xlu0 %1652, %v1303_v36  }
  0xdc   : > { %v499_v37 = vpop.trf.xlu1 }
  0xdd   : > { %v467_v38 = vpop.trf.xlu0 }
  0xde   : > { %v586_v39 = vcombine.low %v467_v38, %v499_v37 }
  0xe4   : > { %v563_v40 = vpop.trf.xlu1 }
  0xe5   : > { %v531_v41 = vpop.trf.xlu0 }
  0xe6   : > { %v587_v42 = vcombine.low %v531_v41, %v563_v40 }
  0xe8   : > { %v1549_v43 = vpack.c.bf16 %v587_v42, %v586_v39 }
  0xea   : > { %1550 = vmatprep.subr.bf16.mxu1 %v1549_v43 }
  0xeb   : > { %1552 = vmatpush3.bf16.msra.mxu1 %v1549_v43 }
  0xec   : > { %v858_v46 = vpop.trf.xlu1 }
  0xed   : > { %v826_v47 = vpop.trf.xlu0 }
  0xee   : > { %1526 = vmatmul.mubr.msk.f32.vlgmr.msra.gmra.mrb[0].mxu1 %vm590_vm0, %v581_v44  ;;  %v945_v48 = vcombine.low %v826_v47, %v858_v46 }
  0xef   : > { %1532 = vmatprep.mubr.msk.f32.mxu1 %vm590_vm0, %v400_v45 }
  0xf4   : > { %v922_v49 = vpop.trf.xlu1 }
  0xf5   : > { %v890_v50 = vpop.trf.xlu0 }
  0xf6   : > { %v946_v51 = vcombine.low %v890_v50, %v922_v49 }
  0xf8   : > { %v1557_v52 = vpack.c.bf16 %v946_v51, %v945_v48 }
  0xfa   : > { %1558 = vmatprep.subr.bf16.mxu0 %v1557_v52 }
  0xfb   : > { %1560 = vmatpush3.bf16.msra.mxu0 %v1557_v52 }
  0xfc   : > { %v320_v55 = vpop.trf.xlu1 }
  0xfd   : > { %v288_v56 = vpop.trf.xlu0 }
  0xfe   : > { %1540 = vmatmul.mubr.msk.f32.vlgmr.msra.gmra.mrb[0].mxu0 %vm590_vm0, %v940_v53  ;;  %v676_v57 = vcombine.low %v288_v56, %v320_v55 }
  0xff   : > { %1546 = vmatprep.mubr.msk.f32.mxu0 %vm590_vm0, %v1210_v54 }
 0x104   : > { %v384_v58 = vpop.trf.xlu1 }
 0x105   : > { %v352_v59 = vpop.trf.xlu0 }
 0x106   : > { %v677_v60 = vcombine.low %v352_v59, %v384_v58 }
 0x108   : > { %v1553_v61 = vpack.c.bf16 %v677_v60, %v676_v57 }
 0x10a   : > { %1554 = vmatprep.subr.bf16.mxu1 %v1553_v61 }
 0x10b   : > { %1556 = vmatpush3.bf16.msra.mxu1 %v1553_v61 }
 0x10c   : > { %v1129_v63 = vpop.trf.xlu1 }
 0x10d   : > { %v1097_v0 = vpop.trf.xlu0 }
 0x10e   : > { %1533 = vmatmul.mubr.msk.f32.vlgmr.msra.gmra.mrb[0].mxu1 %vm590_vm0, %v401_v62  ;;  %v1216_v3 = vcombine.low %v1097_v0, %v1129_v63 }
 0x114   : > { %v1193_v1 = vpop.trf.xlu1 }
 0x115   : > { %v1161_v2 = vpop.trf.xlu0 }
 0x116   : > { %v1217_v4 = vcombine.low %v1161_v2, %v1193_v1 }
 0x118   : > { %v1561_v5 = vpack.c.bf16 %v1217_v4, %v1216_v3 }
 0x11a   : > { %1562 = vmatprep.subr.bf16.mxu0 %v1561_v5 }
 0x11b   : > { %1564 = vmatpush3.bf16.msra.mxu0 %v1561_v5 }
 0x11e   : > { %1547 = vmatmul.mubr.msk.f32.vlgmr.msra.gmra.mrb[0].mxu0 %vm590_vm0, %v1211_v6 }
 0x136   : > { %v1313_v10 = vpop.permute.xlu1 %1312 }
 0x142   : > { %v1308_v13 = vpop.permute.xlu0 %1307 }
 0x1e1   : > { %v1534_v7 = vpop.f32.mrb[0].mxu1 }
 0x1e2   : > { %v752_v8 = vpop.f32.mrb[1].mxu1 }
 0x1f1   : > { %v1548_v9 = vpop.f32.mrb[0].mxu0 }
 0x1f2   : > { %v1565_v11 = vadd.f32 %v1548_v9, %v1534_v7  ;;  %v1292_v12 = vpop.f32.mrb[1].mxu0 }
 0x1f3   : > { %v1566_v14 = vadd.f32 %v1292_v12, %v752_v8 }
 0x1f4   : > { %v1316_v15 = vadd.f32 %v1565_v11, %v1313_v10 }
 0x1f5   : > { %v1315_v16 = vadd.f32 %v1566_v14, %v1308_v13 }
 0x1f6   : > { %1318 = vst.msk [vmem:[%s222_s11 + $0x8] sm:$0xff] %vm590_vm0, %v1316_v15 }
 0x1f7   : > { %1317 = vst.msk [vmem:[%s222_s11] sm:$0xff] %vm590_vm0, %v1315_v16 }
 0x1f8   : > { %1757 = shalt.err (!%p1754_p5)
}
 0x1f9   : > { %s1758_s6 = scalar_lea.hbm %s2081_s21, 256  ;;  %s1762_s24 = scalar_lea.hbm %s2135_s3, 512 }
 0x1fa   : > { %p1759_p9 = scmp.ne.s32.totalorder %s2081_s21, %s1758_s6  ;;  %p1763_p3 = scmp.lt.u32.totalorder %s2081_s21, %s2135_s3 }
 0x1fb   : > { %p1764_p7 = scmp.lt.u32.totalorder %s1762_s24, %s1758_s6  ;;  %p1766_p4 = scmp.lt.u32.totalorder %s1758_s6, %s2081_s21 }
 0x1fc   : > { %p1760_p1 = pnand %p1759_p9, %p1958_p10 }
 0x1fd   : > { %p1765_p13 = por %p1764_p7, %p1763_p3 }
 0x1fe   : > { %p1761_p2 = pneg %p1760_p1 }
 0x1ff   : > { %p1767_p6 = por %p1766_p4, %p1765_p13 }
 0x201   : > { %p1768_p8 = pnand %p1767_p6, %p1761_p2 }
 0x203   : > { %1771 = shalt.err (!%p1768_p8)
}
 0x204   : > { %s1840_s11 = smov 128   ;;  %s1841_s26 = smov 8  }
 0x205   : > { %1577 = dma.vmem_to_hbm [thread:$0]  (%p1958_p10), %s2076_s18, 256, %s2081_s21, %s1320_s15, %s1840_s11, %s1840_s11, %s1841_s26  }
 0x206 PF: > { %s1349_s7 = sand.u32 1, %s1810_s12   ;;  %p2153_p12 = scmp.ne.s32.totalorder %s2143_s23, 0 }
 0x207   : > { %p2154_p11 = scmp.ge.s32.totalorder %s1830_s17, 2  ;;  %s1350_s8 = scalar_lea.sflag [#allocation4], %s1349_s7 }
 0x209   : > { %p1588_p0 = pnand %p2154_p11, %p2153_p12 }
 0x20b   : > { %1805 = dma.done.wait (!%p1588_p0), %s1350_s8, 256  }
 0x20c   : > { %1807 = vsyncadd (!%p1588_p0), %s1350_s8, 4294967040  ;;  %s20_s17 = sadd.s32 1, %s1830_s17   ;;  %s2155_s12 = smov %s1814_s13 }
 0x20d   : > { %p17_p5 = scmp.ge.s32.totalorder %s20_s17, 4   ;;  %s2156_s13 = smov %s1818_s14 }
 0x20e   : > { %s2157_s14 = smov %s1967_s5  ;;  %s2158_s15 = smov %s1826_s16 }
 0x20f   : > { %s2159_s16 = smov %s2161_s28  ;;  %19 = sbr.rel (!%p17_p5) target bundleno = 7 (0x7), region = 87 }
 0x216   :  { %1355 = vsyncpa [#allocation3], 1 }
 0x217   :  { %1357 = vsyncpa [#allocation3 + $0x1], 1 }
 0x218   :  { %1358 = vsyncpa [#allocation6], 1 }
 0x219   :  { %1359 = vsyncpa [#allocation4], 1 }
 0x21a   :  { %1361 = vsyncpa [#allocation4 + $0x1], 1 }

// kernel: tpu_custom_call.1
= control target key start
LH: loop header
LB: loop body
LE: loop exit
PB: predicated region body
PF: predicated region fallthrough
CT: control target
= control target key end

     0   :  { %vm33_vm0 = vcmask 523264   ;;  %vm131_vm1 = vcmask 130048   ;;  %s278_s1 = inlined_call_operand.vmem [shape: f32[64,16], index: 1, kind: input, shape index: {}]   ;;  %s279_s0 = inlined_call_operand.vmem [shape: f32[32,64], index: 0, kind: input, shape index: {}]   ;;  %s280_s2 = inlined_call_operand.vmem [shape: f32[1,16], index: 2, kind: input, shape index: {}]   ;;  %s281_s3 = inlined_call_operand.vmem [shape: f32[32,16], index: 3, kind: output, shape index: {}]  }
   0x1   :  { %v18_v0 = vld [vmem:[%s278_s1] sm:$0xff]  ;;  %v19_v1 = vld [vmem:[%s278_s1 + $0x8] sm:$0xff]  ;;  %v20_v2 = vld [vmem:[%s278_s1 + $0x10] sm:$0xff] }
   0x2   :  { %v179_v3 = vpack.c.bf16 %v19_v1, %v18_v0  ;;  %v21_v4 = vld [vmem:[%s278_s1 + $0x18] sm:$0xff]  ;;  %v22_v6 = vld [vmem:[%s278_s1 + $0x20] sm:$0xff]  ;;  %v23_v7 = vld [vmem:[%s278_s1 + $0x28] sm:$0xff] }
   0x3   :  { %v183_v5 = vpack.c.bf16 %v21_v4, %v20_v2  ;;  %v14_v8 = vld [vmem:[%s279_s0] sm:$0xff]  ;;  %v16_v9 = vld [vmem:[%s279_s0 + $0x10] sm:$0xff]  ;;  %v187_v10 = vpack.c.bf16 %v23_v7, %v22_v6  ;;  %v25_v12 = vld [vmem:[%s278_s1 + $0x38] sm:$0xff] }
   0x4   :  { %180 = vmatprep.subr.bf16.mxu0 %v179_v3  ;;  %195 = vmatprep.subr.bf16.mxu1 %v179_v3  ;;  %v24_v11 = vld [vmem:[%s278_s1 + $0x30] sm:$0xff]  ;;  %v15_v14 = vld [vmem:[%s279_s0 + $0x8] sm:$0xff]  ;;  %v17_v15 = vld [vmem:[%s279_s0 + $0x18] sm:$0xff] }
   0x5   :  { %182 = vmatpush3.bf16.msra.mxu0 %v179_v3  ;;  %199 = vmatpush3.bf16.msra.mxu1 %v179_v3  ;;  %v191_v13 = vpack.c.bf16 %v25_v12, %v24_v11  ;;  %v140_v16 = vld [vmem:[%s280_s2] ss:$0 sm:$0xff] }
   0x6   :  { %184 = vmatprep.subr.bf16.mxu0 %v183_v5  ;;  %196 = vmatprep.subr.bf16.mxu1 %v183_v5 }
   0x7   :  { %173 = vmatprep.mubr.msk.f32.mxu0 %vm33_vm0, %v14_v8  ;;  %176 = vmatprep.mubr.msk.f32.mxu1 %vm33_vm0, %v16_v9 }
   0x9   :  { %186 = vmatpush3.bf16.msra.mxu0 %v183_v5  ;;  %200 = vmatpush3.bf16.msra.mxu1 %v183_v5 }
   0xa   :  { %188 = vmatprep.subr.bf16.mxu0 %v187_v10  ;;  %197 = vmatprep.subr.bf16.mxu1 %v187_v10 }
   0xd   :  { %190 = vmatpush3.bf16.msra.mxu0 %v187_v10  ;;  %201 = vmatpush3.bf16.msra.mxu1 %v187_v10 }
   0xe   :  { %192 = vmatprep.subr.bf16.mxu0 %v191_v13  ;;  %198 = vmatprep.subr.bf16.mxu1 %v191_v13 }
  0x11   :  { %194 = vmatpush3.bf16.msra.mxu0 %v191_v13  ;;  %202 = vmatpush3.bf16.msra.mxu1 %v191_v13 }
  0x14   :  { %174 = vmatmul.mubr.msk.f32.vlgmr.msra.gmra.mrb[0].mxu0 %vm33_vm0, %v15_v14  ;;  %177 = vmatmul.mubr.msk.f32.vlgmr.msra.gmra.mrb[0].mxu1 %vm33_vm0, %v17_v15 }
  0xe7   :  { %v175_v17 = vpop.f32.mrb[0].mxu0  ;;  %v178_v18 = vpop.f32.mrb[0].mxu1 }
  0xe8   :  { %v118_v19 = vadd.f32 %v175_v17, %v140_v16  ;;  %v128_v20 = vadd.f32 %v178_v18, %v140_v16  ;;  %v112_v21 = vpop.f32.mrb[1].mxu0  ;;  %v122_v22 = vpop.f32.mrb[1].mxu1 }
  0xe9   :  { %v113_v23 = vadd.f32 %v140_v16, %v112_v21  ;;  %v123_v24 = vadd.f32 %v140_v16, %v122_v22 }
  0xea   :  { %133 = vst.msk [vmem:[%s281_s3 + $0x8] sm:$0xff] %vm131_vm1, %v118_v19  ;;  %135 = vst.msk [vmem:[%s281_s3 + $0x18] sm:$0xff] %vm131_vm1, %v128_v20 }
  0xeb   :  { %132 = vst.msk [vmem:[%s281_s3] sm:$0xff] %vm131_vm1, %v113_v23  ;;  %134 = vst.msk [vmem:[%s281_s3 + $0x10] sm:$0xff] %vm131_vm1, %v123_v24 }

</bundles_post_ra>
